<compile_context>
chip_gen: v7x
topology: tpu7x:2x2x1
jax: 0.10.0
libtpu: 0.0.40
codegen_flags: <defaults>
</compile_context>

<pallas_src>
import jax
import jax.numpy as jnp
from jax.experimental import pallas as pl
from jax.experimental.pallas import tpu as pltpu

K = 3          # kernel_size
EPS = 1e-5     # BatchNorm3d default eps


def fused_conv_bn_relu_kernel(pm_ref, w_ref, g_ref, b_ref, o_ref, y_sc, st_sc):
    # pm_ref: (DHW, Kpad)    bf16 im2col patches for batch element n (phase 0 only)
    # w_ref:  (Kpad, Cpad)   bf16 im2col weight (contraction + Cout zero-padded)
    # g_ref:  (1, Cpad)      f32 BN weight (zero-padded)
    # b_ref:  (1, Cpad)      f32 BN bias  (zero-padded)
    # o_ref:  (DHW, Cpad)    f32 normalized + ReLU output for batch element n
    # y_sc:   (N, DHW, Cpad) f32 VMEM-resident conv output (all batch elements)
    # st_sc:  (2, Cpad)      f32 running [sum, sumsq]; becomes [scale, shift] in phase 1
    phase = pl.program_id(0)
    n = pl.program_id(1)

    @pl.when((phase == 0) & (n == 0))
    def _init_stats():
        st_sc[...] = jnp.zeros_like(st_sc)

    @pl.when(phase == 0)
    def _conv_and_stats():
        # Single MXU matmul for the whole batch element (no bias: BN cancels it).
        acc = jnp.dot(pm_ref[...], w_ref[...], preferred_element_type=jnp.float32)
        y_sc[n] = acc                                          # stays in VMEM
        s = jnp.sum(acc, axis=0, keepdims=True)                # (1, Cpad)
        ss = jnp.sum(acc * acc, axis=0, keepdims=True)         # (1, Cpad)
        st_sc[...] = st_sc[...] + jnp.concatenate([s, ss], axis=0)

    @pl.when(phase == 1)
    def _bn_relu():
        @pl.when(n == 0)
        def _finalize_stats():
            # Turn [sum, sumsq] into per-channel [scale, shift] once.
            count = y_sc.shape[0] * y_sc.shape[1]              # N * D * H * W (static)
            inv_count = 1.0 / count
            mean = st_sc[0:1, :] * inv_count                   # (1, Cpad)
            ex2 = st_sc[1:2, :] * inv_count
            var = jnp.maximum(ex2 - mean * mean, 0.0)          # biased, clamped >= 0
            inv_std = jax.lax.rsqrt(var + EPS)
            scale = g_ref[...] * inv_std
            shift = b_ref[...] - mean * scale
            st_sc[0:1, :] = scale
            st_sc[1:2, :] = shift
        o_ref[...] = jnp.maximum(y_sc[n] * st_sc[0:1, :] + st_sc[1:2, :], 0.0)


def conv_block(x_ncdhw, w_oikkk, bias, gamma, beta):
    """ConvBlock forward.

    x_ncdhw: (N, Cin, D, H, W) f32.  w_oikkk: (Cout, Cin, K, K, K) (PyTorch layout).
    `bias` is accepted for API parity but unused: train-mode BatchNorm cancels a
    per-channel constant bias exactly, so the output is mathematically identical.
    """
    del bias  # cancelled by train-mode BN
    N, Cin, D, H, W = x_ncdhw.shape
    Cout = w_oikkk.shape[0]
    K3C = K * K * K * Cin
    Kpad = ((K3C + 127) // 128) * 128                  # contraction padded to 128-mult
    Cpad = ((Cout + 127) // 128) * 128                 # lane-dense channel padding
    DHW = D * H * W

    # --- wrapper-side im2col (XLA): channels-last, bf16, spatial zero-pad ---
    x = jnp.transpose(x_ncdhw, (0, 2, 3, 4, 1)).astype(jnp.bfloat16)
    xp = jnp.pad(x, ((0, 0), (1, 1), (1, 1), (1, 1), (0, 0)))
    cols = []
    for kd in range(K):
        for kh in range(K):
            for kw in range(K):
                cols.append(xp[:, kd:kd + D, kh:kh + H, kw:kw + W, :])
    # column index = ((kd*K + kh)*K + kw)*Cin + cin  (matches weight reshape below)
    pm = jnp.concatenate(cols, axis=-1).reshape(N, DHW, K3C)
    pm = jnp.pad(pm, ((0, 0), (0, 0), (0, Kpad - K3C)))          # (N, DHW, Kpad) bf16

    # Weights -> im2col layout (K3C, Cout), pad both dims, bf16.
    w2 = jnp.transpose(w_oikkk, (2, 3, 4, 1, 0)).reshape(K3C, Cout)
    w2 = jnp.pad(w2, ((0, Kpad - K3C), (0, Cpad - Cout))).astype(jnp.bfloat16)

    gpad = jnp.pad(gamma.astype(jnp.float32), (0, Cpad - Cout)).reshape(1, Cpad)
    bepad = jnp.pad(beta.astype(jnp.float32), (0, Cpad - Cout)).reshape(1, Cpad)

    out = pl.pallas_call(
        fused_conv_bn_relu_kernel,
        out_shape=jax.ShapeDtypeStruct((N, DHW, Cpad), jnp.float32),
        grid_spec=pltpu.PrefetchScalarGridSpec(
            num_scalar_prefetch=0,
            grid=(2, N),                               # phase-major, batch-minor
            in_specs=[
                # Patches: real block during phase 0; collapse to block 0 in
                # phase 1 (stays resident -> at most one redundant fetch).
                pl.BlockSpec((None, DHW, Kpad), lambda p, n: (n * (1 - p), 0, 0)),
                pl.BlockSpec((Kpad, Cpad), lambda p, n: (0, 0)),
                pl.BlockSpec((1, Cpad), lambda p, n: (0, 0)),
                pl.BlockSpec((1, Cpad), lambda p, n: (0, 0)),
            ],
            # Output: collapse to block 0 during phase 0 (never written there,
            # never flushed), real per-n blocks during phase 1.
            out_specs=pl.BlockSpec((None, DHW, Cpad), lambda p, n: (p * n, 0, 0)),
            scratch_shapes=[
                pltpu.VMEM((N, DHW, Cpad), jnp.float32),   # resident conv output
                pltpu.VMEM((2, Cpad), jnp.float32),        # [sum,sumsq] -> [scale,shift]
            ],
        ),
        compiler_params=pltpu.CompilerParams(
            dimension_semantics=("arbitrary", "arbitrary")),
    )(pm, w2, gpad, bepad)

    # Drop the channel padding and return to NCDHW.
    out = out[:, :, :Cout].reshape(N, D, H, W, Cout)
    return jnp.transpose(out, (0, 4, 1, 2, 3))


def reference(x_ncdhw, w_oikkk, bias, gamma, beta):
    """Pure-JAX f32 reference matching Conv3d + train-mode BatchNorm3d + ReLU."""
    y = jax.lax.conv_general_dilated(
        x_ncdhw, w_oikkk, window_strides=(1, 1, 1),
        padding=((1, 1), (1, 1), (1, 1)),
        dimension_numbers=("NCDHW", "OIDHW", "NCDHW"))
    y = y + bias.reshape(1, -1, 1, 1, 1)
    mean = jnp.mean(y, axis=(0, 2, 3, 4), keepdims=True)
    var = jnp.mean((y - mean) ** 2, axis=(0, 2, 3, 4), keepdims=True)
    y = (y - mean) * jax.lax.rsqrt(var + EPS)
    y = y * gamma.reshape(1, -1, 1, 1, 1) + beta.reshape(1, -1, 1, 1, 1)
    return jnp.maximum(y, 0.0)


if __name__ == "__main__":
    # Small shapes consistent with ConvBlock(in_channel=4, out_channel=8).
    N, Cin, Cout, D, H, W = 2, 4, 8, 4, 8, 8

    key = jax.random.PRNGKey(0)
    kx, kw, kb = jax.random.split(key, 3)
    x = jax.random.normal(kx, (N, Cin, D, H, W), dtype=jnp.float32)
    # PyTorch Conv3d weight layout: (Cout, Cin, KD, KH, KW)
    w_oikkk = jax.random.normal(kw, (Cout, Cin, K, K, K), dtype=jnp.float32) * 0.1
    bias = jax.random.normal(kb, (Cout,), dtype=jnp.float32) * 0.1
    gamma = jnp.ones((Cout,), jnp.float32)    # BatchNorm3d default init
    beta = jnp.zeros((Cout,), jnp.float32)

    out = conv_block(x, w_oikkk, bias, gamma, beta)
    out = jax.block_until_ready(out)

    ref = reference(x, w_oikkk, bias, gamma, beta)
    assert out.shape == ref.shape == (N, Cout, D, H, W)
    # Tolerance accounts for bf16 MXU operands (f32 accumulation); logic errors
    # (tap ordering, stats, bias cancellation) would produce O(1) discrepancies.
    assert jnp.allclose(out, ref, atol=5e-2, rtol=5e-2), (
        float(jnp.max(jnp.abs(out - ref))))

    print("KERNEL_OK")
</pallas_src>

<mosaic_0001>
module attributes {stable_mosaic.version = 11 : i64} {
  func.func @fused_conv_bn_relu_kernel(%arg0: i32, %arg1: i32, %arg2: memref<1x256x128xbf16, #tpu.memory_space<vmem>>, %arg3: memref<128x128xbf16, #tpu.memory_space<vmem>>, %arg4: memref<1x128xf32, #tpu.memory_space<vmem>>, %arg5: memref<1x128xf32, #tpu.memory_space<vmem>>, %arg6: memref<1x256x128xf32, #tpu.memory_space<vmem>>, %arg7: memref<2x256x128xf32, #tpu.memory_space<vmem>>, %arg8: memref<2x128xf32, #tpu.memory_space<vmem>>) attributes {dimension_semantics = [#tpu.dimension_semantics<arbitrary>, #tpu.dimension_semantics<arbitrary>], iteration_bounds = array<i64: 2, 2>, scalar_prefetch = 0 : i64, scratch_operands = 2 : i64, tpu.core_type = #tpu.core_type<tc>, window_params = [{transform_indices = @transform_0, window_bounds = array<i64: 1, 256, 128>}, {pipeline_mode = #tpu.pipeline_mode<synchronous>, transform_indices = @transform_1, window_bounds = array<i64: 128, 128>}, {pipeline_mode = #tpu.pipeline_mode<synchronous>, transform_indices = @transform_2, window_bounds = array<i64: 1, 128>}, {pipeline_mode = #tpu.pipeline_mode<synchronous>, transform_indices = @transform_3, window_bounds = array<i64: 1, 128>}, {transform_indices = @transform_4, window_bounds = array<i64: 1, 256, 128>}]} {
    %c0_i32 = arith.constant 0 : i32
    %0 = arith.cmpi eq, %arg0, %c0_i32 : i32
    %c0_i32_0 = arith.constant 0 : i32
    %1 = arith.cmpi eq, %arg1, %c0_i32_0 : i32
    %2 = arith.andi %0, %1 : i1
    %3 = arith.extui %2 : i1 to i32
    %c0_i32_1 = arith.constant 0 : i32
    %4 = arith.cmpi ne, %3, %c0_i32_1 : i32
    scf.if %4 {
      %cst = arith.constant 0.000000e+00 : f32
      %11 = vector.broadcast %cst : f32 to vector<2x128xf32>
      %c0 = arith.constant 0 : index
      %c0_5 = arith.constant 0 : index
      %12 = vector.load %arg8[%c0, %c0_5] : memref<2x128xf32, #tpu.memory_space<vmem>>, vector<2x128xf32>
      tpu.vector_store %arg8[%c0, %c0_5], %11 {strides = array<i32>} : memref<2x128xf32, #tpu.memory_space<vmem>>, vector<2x128xf32>,
    } else {
    }
    %c0_i32_2 = arith.constant 0 : i32
    %5 = arith.cmpi eq, %arg0, %c0_i32_2 : i32
    %6 = arith.extui %5 : i1 to i32
    %c0_i32_3 = arith.constant 0 : i32
    %7 = arith.cmpi ne, %6, %c0_i32_3 : i32
    scf.if %7 {
      %c0 = arith.constant 0 : index
      %c0_5 = arith.constant 0 : index
      %c0_6 = arith.constant 0 : index
      %11 = vector.load %arg2[%c0, %c0_5, %c0_6] : memref<1x256x128xbf16, #tpu.memory_space<vmem>>, vector<1x256x128xbf16>
      %12 = vector.shape_cast %11 : vector<1x256x128xbf16> to vector<256x128xbf16>
      %c0_7 = arith.constant 0 : index
      %c0_8 = arith.constant 0 : index
      %13 = vector.load %arg3[%c0_7, %c0_8] : memref<128x128xbf16, #tpu.memory_space<vmem>>, vector<128x128xbf16>
      %cst = arith.constant dense<0.000000e+00> : vector<256x128xf32>
      %14 = tpu.matmul %12, %13, %cst {dimension_numbers = #tpu.dot_dimension_numbers<[1], [0], [0], [1], [0, 0, 1, 1], [], []>} : vector<256x128xbf16>, vector<128x128xbf16>, vector<256x128xf32> -> vector<256x128xf32>
      %15 = arith.index_cast %arg1 : i32 to index
      %c0_9 = arith.constant 0 : index
      %c0_10 = arith.constant 0 : index
      %16 = vector.load %arg7[%15, %c0_9, %c0_10] : memref<2x256x128xf32, #tpu.memory_space<vmem>>, vector<1x256x128xf32>
      %17 = vector.shape_cast %16 : vector<1x256x128xf32> to vector<256x128xf32>
      %18 = vector.shape_cast %14 : vector<256x128xf32> to vector<1x256x128xf32>
      tpu.vector_store %arg7[%15, %c0_9, %c0_10], %18 {strides = array<i32>} : memref<2x256x128xf32, #tpu.memory_space<vmem>>, vector<1x256x128xf32>,
      %cst_11 = arith.constant dense<0.000000e+00> : vector<128xf32>
      %19 = vector.multi_reduction <add>, %14, %cst_11 [0] : vector<256x128xf32> to vector<128xf32>
      %20 = vector.shape_cast %19 : vector<128xf32> to vector<1x128xf32>
      %21 = arith.mulf %14, %14 : vector<256x128xf32>
      %cst_12 = arith.constant dense<0.000000e+00> : vector<128xf32>
      %22 = vector.multi_reduction <add>, %21, %cst_12 [0] : vector<256x128xf32> to vector<128xf32>
      %23 = vector.shape_cast %22 : vector<128xf32> to vector<1x128xf32>
      %c0_13 = arith.constant 0 : index
      %c0_14 = arith.constant 0 : index
      %24 = vector.load %arg8[%c0_13, %c0_14] : memref<2x128xf32, #tpu.memory_space<vmem>>, vector<2x128xf32>
      %25 = tpu.concatenate %20, %23 in 0 : vector<1x128xf32>, vector<1x128xf32> -> vector<2x128xf32>
      %26 = arith.addf %24, %25 : vector<2x128xf32>
      %c0_15 = arith.constant 0 : index
      %c0_16 = arith.constant 0 : index
      %27 = vector.load %arg8[%c0_15, %c0_16] : memref<2x128xf32, #tpu.memory_space<vmem>>, vector<2x128xf32>
      tpu.vector_store %arg8[%c0_15, %c0_16], %26 {strides = array<i32>} : memref<2x128xf32, #tpu.memory_space<vmem>>, vector<2x128xf32>,
    } else {
    }
    %c1_i32 = arith.constant 1 : i32
    %8 = arith.cmpi eq, %arg0, %c1_i32 : i32
    %9 = arith.extui %8 : i1 to i32
    %c0_i32_4 = arith.constant 0 : i32
    %10 = arith.cmpi ne, %9, %c0_i32_4 : i32
    scf.if %10 {
      %c0_i32_5 = arith.constant 0 : i32
      %11 = arith.cmpi eq, %arg1, %c0_i32_5 : i32
      %12 = arith.extui %11 : i1 to i32
      %c0_i32_6 = arith.constant 0 : i32
      %13 = arith.cmpi ne, %12, %c0_i32_6 : i32
      scf.if %13 {
        %c0_14 = arith.constant 0 : index
        %c0_15 = arith.constant 0 : index
        %28 = vector.load %arg8[%c0_14, %c0_15] : memref<2x128xf32, #tpu.memory_space<vmem>>, vector<1x128xf32>
        %cst_16 = arith.constant 0.001953125 : f32
        %29 = vector.broadcast %cst_16 : f32 to vector<1x128xf32>
        %30 = arith.mulf %28, %29 : vector<1x128xf32>
        %c1_17 = arith.constant 1 : index
        %c0_18 = arith.constant 0 : index
        %31 = vector.load %arg8[%c1_17, %c0_18] : memref<2x128xf32, #tpu.memory_space<vmem>>, vector<1x128xf32>
        %cst_19 = arith.constant 0.001953125 : f32
        %32 = vector.broadcast %cst_19 : f32 to vector<1x128xf32>
        %33 = arith.mulf %31, %32 : vector<1x128xf32>
        %34 = arith.mulf %30, %30 : vector<1x128xf32>
        %35 = arith.subf %33, %34 : vector<1x128xf32>
        %cst_20 = arith.constant 0.000000e+00 : f32
        %36 = vector.broadcast %cst_20 : f32 to vector<1x128xf32>
        %37 = arith.maximumf %35, %36 : vector<1x128xf32>
        %cst_21 = arith.constant 9.99999974E-6 : f32
        %38 = vector.broadcast %cst_21 : f32 to vector<1x128xf32>
        %39 = arith.addf %37, %38 : vector<1x128xf32>
        %40 = math.rsqrt %39 : vector<1x128xf32>
        %c0_22 = arith.constant 0 : index
        %c0_23 = arith.constant 0 : index
        %41 = vector.load %arg4[%c0_22, %c0_23] : memref<1x128xf32, #tpu.memory_space<vmem>>, vector<1x128xf32>
        %42 = arith.mulf %41, %40 : vector<1x128xf32>
        %c0_24 = arith.constant 0 : index
        %c0_25 = arith.constant 0 : index
        %43 = vector.load %arg5[%c0_24, %c0_25] : memref<1x128xf32, #tpu.memory_space<vmem>>, vector<1x128xf32>
        %44 = arith.mulf %30, %42 : vector<1x128xf32>
        %45 = arith.subf %43, %44 : vector<1x128xf32>
        %c0_26 = arith.constant 0 : index
        %c0_27 = arith.constant 0 : index
        %46 = vector.load %arg8[%c0_26, %c0_27] : memref<2x128xf32, #tpu.memory_space<vmem>>, vector<1x128xf32>
        tpu.vector_store %arg8[%c0_26, %c0_27], %42 {strides = array<i32>} : memref<2x128xf32, #tpu.memory_space<vmem>>, vector<1x128xf32>,
        %c1_28 = arith.constant 1 : index
        %c0_29 = arith.constant 0 : index
        %47 = vector.load %arg8[%c1_28, %c0_29] : memref<2x128xf32, #tpu.memory_space<vmem>>, vector<1x128xf32>
        tpu.vector_store %arg8[%c1_28, %c0_29], %45 {strides = array<i32>} : memref<2x128xf32, #tpu.memory_space<vmem>>, vector<1x128xf32>,
      } else {
      }
      %14 = arith.index_cast %arg1 : i32 to index
      %c0 = arith.constant 0 : index
      %c0_7 = arith.constant 0 : index
      %15 = vector.load %arg7[%14, %c0, %c0_7] : memref<2x256x128xf32, #tpu.memory_space<vmem>>, vector<1x256x128xf32>
      %16 = vector.shape_cast %15 : vector<1x256x128xf32> to vector<256x128xf32>
      %c0_8 = arith.constant 0 : index
      %c0_9 = arith.constant 0 : index
      %17 = vector.load %arg8[%c0_8, %c0_9] : memref<2x128xf32, #tpu.memory_space<vmem>>, vector<1x128xf32>
      %18 = vector.broadcast %17 : vector<1x128xf32> to vector<256x128xf32>
      %19 = arith.mulf %16, %18 : vector<256x128xf32>
      %c1 = arith.constant 1 : index
      %c0_10 = arith.constant 0 : index
      %20 = vector.load %arg8[%c1, %c0_10] : memref<2x128xf32, #tpu.memory_space<vmem>>, vector<1x128xf32>
      %21 = vector.broadcast %20 : vector<1x128xf32> to vector<256x128xf32>
      %22 = arith.addf %19, %21 : vector<256x128xf32>
      %cst = arith.constant 0.000000e+00 : f32
      %23 = vector.broadcast %cst : f32 to vector<256x128xf32>
      %24 = arith.maximumf %22, %23 : vector<256x128xf32>
      %c0_11 = arith.constant 0 : index
      %c0_12 = arith.constant 0 : index
      %c0_13 = arith.constant 0 : index
      %25 = vector.load %arg6[%c0_11, %c0_12, %c0_13] : memref<1x256x128xf32, #tpu.memory_space<vmem>>, vector<1x256x128xf32>
      %26 = vector.shape_cast %25 : vector<1x256x128xf32> to vector<256x128xf32>
      %27 = vector.shape_cast %24 : vector<256x128xf32> to vector<1x256x128xf32>
      tpu.vector_store %arg6[%c0_11, %c0_12, %c0_13], %27 {strides = array<i32>} : memref<1x256x128xf32, #tpu.memory_space<vmem>>, vector<1x256x128xf32>,
    } else {
    }
    return
  }
  func.func @transform_0(%arg0: i32, %arg1: i32) -> (i32, i32, i32) {
    %c1_i32 = arith.constant 1 : i32
    %0 = arith.subi %c1_i32, %arg0 : i32
    %1 = arith.muli %arg1, %0 : i32
    %c0_i32 = arith.constant 0 : i32
    %c0_i32_0 = arith.constant 0 : i32
    %c0_i32_1 = arith.constant 0 : i32
    return %1, %c0_i32, %c0_i32_0 : i32, i32, i32
  }
  func.func @transform_1(%arg0: i32, %arg1: i32) -> (i32, i32) {
    %c0_i32 = arith.constant 0 : i32
    %c0_i32_0 = arith.constant 0 : i32
    %c0_i32_1 = arith.constant 0 : i32
    return %c0_i32, %c0_i32_0 : i32, i32
  }
  func.func @transform_2(%arg0: i32, %arg1: i32) -> (i32, i32) {
    %c0_i32 = arith.constant 0 : i32
    %c0_i32_0 = arith.constant 0 : i32
    %c0_i32_1 = arith.constant 0 : i32
    return %c0_i32, %c0_i32_0 : i32, i32
  }
  func.func @transform_3(%arg0: i32, %arg1: i32) -> (i32, i32) {
    %c0_i32 = arith.constant 0 : i32
    %c0_i32_0 = arith.constant 0 : i32
    %c0_i32_1 = arith.constant 0 : i32
    return %c0_i32, %c0_i32_0 : i32, i32
  }
  func.func @transform_4(%arg0: i32, %arg1: i32) -> (i32, i32, i32) {
    %0 = arith.muli %arg0, %arg1 : i32
    %c0_i32 = arith.constant 0 : i32
    %c0_i32_0 = arith.constant 0 : i32
    %c0_i32_1 = arith.constant 0 : i32
    return %0, %c0_i32, %c0_i32_0 : i32, i32, i32
  }
}

</mosaic_0001>

<bundles_post_ra>
// kernel: tpu_custom_call.1
= control target key start
LH: loop header
LB: loop body
LE: loop exit
PB: predicated region body
PF: predicated region fallthrough
CT: control target
= control target key end

     0   :  { %s2127_s0 = inlined_call_operand.hbm [shape: bf16[2,256,128], index: 0, kind: input, shape index: {}]   ;;  %s2128_s1 = inlined_call_operand.hbm [shape: bf16[128,128], index: 1, kind: input, shape index: {}]   ;;  %s2129_s2 = inlined_call_operand.vmem [shape: f32[1,128], index: 2, kind: input, shape index: {}]   ;;  %s2130_s3 = inlined_call_operand.vmem [shape: f32[1,128], index: 3, kind: input, shape index: {}]   ;;  %s2131_s4 = inlined_call_operand.hbm [shape: f32[2,256,128], index: 4, kind: output, shape index: {}]  }
   0x1   :  { %2147 = sst [smem:[#allocation19_spill]] %s2128_s1 }
   0x2   :  { %2148 = sst [smem:[#allocation20_spill]] %s2129_s2 }
   0x3   :  { %2149 = sst [smem:[#allocation21_spill]] %s2130_s3 }
   0x4   :  { %2150 = sst [smem:[#allocation22_spill]] %s2131_s4 }
   0x5   :  { %9 = vsyncpa [#allocation5], 0 }
   0x6   :  { %11 = vsyncpa [#allocation5 + $0x1], 0 }
   0x7   :  { %12 = vsyncpa [#allocation8], 0 }
   0x8   :  { %13 = vsyncpa [#allocation6], 0 }
   0x9   :  { %15 = vsyncpa [#allocation6 + $0x1], 0  ;;  %s1572_s15 = smov 0   ;;  %s1574_s16 = smov 0  }
   0xa   :  { %s1576_s17 = smov 0   ;;  %s1578_s18 = smov 0  }
   0xb   :  { %s1580_s19 = smov 0   ;;  %s1582_s20 = smov 0  }
   0xc   :  { %s1584_s21 = smov 0   ;;  %s1586_s22 = smov 0  }
   0xd   :  { %s1588_s23 = smov 0   ;;  %s1590_s24 = smov 0  }
   0xe   :  { %s1592_s25 = smov 0  }
   0xf LB: > { %2151 = sst [smem:[#allocation13_spill]] %s1497_s15  ;;  %s1071_s26 = sadd.s32 4294967295, %s1537_s25   ;;  %s1537_s25 = sphi %s1592_s25, %s21_s25   ;;  %s1533_s24 = sphi %s1590_s24, %s2189_s24   ;;  %s1529_s23 = sphi %s1588_s23, %s2188_s23   ;;  %s1525_s22 = sphi %s1586_s22, %s2180_s22   ;;  %s1521_s21 = sphi %s1584_s21, %s2179_s21   ;;  %s1517_s20 = sphi %s1582_s20, %s2187_s20   ;;  %s1513_s19 = sphi %s1580_s19, %s2186_s19   ;;  %s1509_s18 = sphi %s1578_s18, %s2185_s18   ;;  %s1505_s17 = sphi %s1576_s17, %s2184_s17   ;;  %s1501_s16 = sphi %s1574_s16, %s2183_s16   ;;  %s1497_s15 = sphi %s1572_s15, %s2182_s15  }
  0x10   : > { %2152 = sst [smem:[#allocation14_spill]] %s1529_s23  ;;  %s1072_s27 = sadd.s32 4294967294, %s1537_s25  }
  0x11   : > { %2153 = sst [smem:[#allocation15_spill]] %s1533_s24  ;;  %p57_p0 = scmp.ne.s32.totalorder %s1513_s19, %s1509_s18 }
  0x12   : > { %p1628_p1 = scmp.eq.s32.totalorder %s1071_s26, 0  ;;  %p145_p2 = scmp.ne.s32.totalorder %s1505_s17, %s1501_s16 }
  0x13   : > { %p146_p4 = scmp.eq.s32.totalorder %s1071_s26, 3  ;;  %p151_p5 = scmp.ne.s32.totalorder %s1501_s16, %s1497_s15 }
  0x14   : > { %s2154_s28 = scalar_select %p1628_p1, 1, 0 }
  0x15   : > { %p1636_p3 = por %p1628_p1, %p57_p0  ;;  %p152_p6 = scmp.eq.s32.totalorder %s1072_s27, 3 }
  0x16   : > { %p1642_p7 = por %p146_p4, %p145_p2  ;;  %p1073_p8 = scmp.ge.s32.totalorder %s1537_s25, 1 }
  0x17   : > { %s2155_s29 = scalar_select %p1636_p3, 1, 0 }
  0x18   : > { %s2156_s30 = scalar_select %p1642_p7, 1, 0 }
  0x19   : > { %p1647_p9 = por %p152_p6, %p151_p5  ;;  %p159_p10 = scmp.lt.s32.totalorder %s1537_s25, 5 }
  0x1a   : > { %2157 = sst [smem:[#allocation16_spill]] %s2156_s30  ;;  %s1539_s7 = smov [#allocation7]  }
  0x1b   : > { %s2158_s5 = scalar_select %p1647_p9, 1, 0 }
  0x1c   : > { %p1652_p11 = pnand %p1073_p8, %p159_p10  ;;  %s171_s8 = sshll.u32 %s1539_s7, 4  ;;  %s172_s8 = int_to_ptr.vmem [resolvable:$true] %s171_s8 }
  0x1d   : > { %2159 = sst [smem:[#allocation17_spill]] %s2158_s5  ;;  %s2162_s1 = sld [smem:[#allocation19_spill]] }
  0x1e   : > { %s2160_s6 = scalar_select %p1652_p11, 1, 0 }
  0x1f   : > { %p1217_p12 = pneg %p1652_p11 }
  0x21   : > { %p1660_p13 = pnand %p1217_p12, %p1628_p1 }
  0x23   : > { %s1353_s12 = scalar_lea.hbm %s2162_s1, 1024  ;;  %p1355_p2 = pneg %p1660_p13 }
  0x24   : > { %p1354_p0 = scmp.ne.s32.totalorder %s2162_s1, %s1353_s12  ;;  %p1360_p6 = scmp.lt.u32.totalorder %s1353_s12, %s2162_s1 }
  0x26   : > { %p1356_p4 = pnand %p1355_p2, %p1354_p0 }
  0x28   : > { %p1357_p5 = pneg %p1356_p4 }
  0x2a   : > { %p1362_p8 = pnand %p1360_p6, %p1357_p5 }
  0x2c   : > { %1365 = shalt.err (!%p1362_p8)
}
  0x2d   : > { %s1366_s27 = scalar_lea.vmem %s172_s8, 1024  ;;  %p1374_p7 = scmp.lt.s32.totalorder %s172_s8, %s172_s8 }
  0x2e   : > { %p1367_p10 = scmp.ne.s32.totalorder %s172_s8, %s1366_s27  ;;  %p1375_p1 = scmp.lt.s32.totalorder %s1366_s27, %s1366_s27 }
  0x30   : > { %p1369_p12 = pnand %p1367_p10, %p1355_p2  ;;  %p1376_p3 = por %p1375_p1, %p1374_p7 }
  0x32   : > { %p1370_p9 = pneg %p1369_p12 }
  0x34   : > { %p1377_p11 = pnand %p1376_p3, %p1370_p9 }
  0x36   : > { %1380 = shalt.err (!%p1377_p11)
}
  0x37   : > { %s2137_s7 = smov 64   ;;  %s2138_s10 = smov 4  }
  0x38   : > { %1220 = dma.hbm_to_vmem [thread:$0]  (!%p1660_p13), %s2162_s1, 1024, %s172_s8, [#allocation8], %s2137_s7, %s2137_s7, %s2138_s10  }
  0x39   : > { %s135_s13 = sadd.s32 1, %s1505_s17  ;;  %s30_s14 = sadd.s32 1, %s1529_s23 }
  0x3a   : > { %p31_p1 = scmp.ge.s32.totalorder %s30_s14, 2  ;;  %s33_s18 = sadd.s32 1, %s1533_s24 }
  0x3b   : > { %s37_s26 = ssub.s32 1, %s1533_s24  ;;  %s44_s27 = sadd.s32 1, %s1517_s20 }
  0x3c   : > { %s2191_s14 = smov (%p31_p1, %s30_s14), 0  ;;  %s2193_s18 = smov (!%p31_p1, %s33_s18), %s1533_s24 }
  0x3d   : > { %s38_s9 = smul.u32 %s1529_s23, %s37_s26  ;;  %p35_p3 = scmp.ge.s32.totalorder %s2193_s18, 2 }
  0x3e   : > { %p51_p7 = scmp.ne.s32.totalorder %s1517_s20, %s1513_s19  ;;  %p52_p9 = scmp.eq.s32.totalorder %s1537_s25, 0 }
  0x3f   : > { %s130_s11 = smul.u32 %s1529_s23, %s1533_s24  ;;  %s2195_s18 = smov (%p35_p3, %s2193_s18), 0 }
  0x40   : > { %2163 = sst [smem:[#allocation18_spill]] %s2195_s18  ;;  %p1230_p11 = scmp.lt.s32.totalorder %s1537_s25, 4 }
  0x41   : > { %s191_s8 = sand.u32 1, %s1517_s20   ;;  %s39_s12 = ssub.s32 1, %s2195_s18 }
  0x42   : > { %s131_s7 = smul.u32 %s2195_s18, %s2191_s14  ;;  %p1705_p13 = por %p52_p9, %p51_p7 }
  0x43   : > { %s40_s10 = smul.u32 %s39_s12, %s2191_s14  ;;  %s1076_s5 = sshll.u32 %s191_s8, 7 }
  0x44   : > { %s132_s26 = ssub.s32 %s130_s11, %s131_s7  ;;  %s1119_s4 = sshll.u32 %s38_s9, 11 }
  0x45   : > { %s41_s15 = ssub.s32 %s38_s9, %s40_s10  ;;  %p133_p0 = scmp.eq.s32.totalorder %s132_s26, 0 }
  0x46   : > { %p42_p2 = scmp.eq.s32.totalorder %s41_s15, 0  ;;  %s195_s30 = scalar_lea.vmem [#allocation4], %s1076_s5 }
  0x47   : > { %s1710_s24 = scalar_select %p133_p0, %s1505_s17, %s135_s13  }
  0x48   : > { %s1713_s23 = scalar_select %p42_p2, %s1517_s20, %s44_s27  }
  0x49   : > { %s204_s3 = sshll.u32 %s195_s30, 4  ;;  %s1718_s12 = scalar_lea.hbm %s2127_s0, %s1119_s4  ;;  %s1720_s3 = int_to_ptr.vmem [resolvable:$true] %s204_s3 }
  0x4a   : > { %p1726_p4 = pnand %p1230_p11, %p1705_p13  ;;  %s1730_s30 = scalar_lea.sflag [#allocation5], %s191_s8 }
  0x4b   : > { %s1381_s5 = scalar_lea.hbm %s1718_s12, 2048  ;;  %s1386_s1 = scalar_lea.hbm %s2127_s0, 4096 }
  0x4c   : > { %p1382_p5 = scmp.ne.s32.totalorder %s1718_s12, %s1381_s5  ;;  %p1383_p6 = pneg %p1726_p4 }
  0x4d   : > { %p1387_p12 = scmp.lt.u32.totalorder %s1718_s12, %s2127_s0  ;;  %p1388_p1 = scmp.lt.u32.totalorder %s1386_s1, %s1381_s5 }
  0x4e   : > { %p1384_p8 = pnand %p1383_p6, %p1382_p5  ;;  %p1390_p7 = scmp.lt.u32.totalorder %s1381_s5, %s1718_s12 }
  0x4f   : > { %p1389_p3 = por %p1388_p1, %p1387_p12 }
  0x50   : > { %p1385_p10 = pneg %p1384_p8 }
  0x51   : > { %p1391_p9 = por %p1390_p7, %p1389_p3 }
  0x53   : > { %p1392_p11 = pnand %p1391_p9, %p1385_p10 }
  0x55   : > { %1395 = shalt.err (!%p1392_p11)
}
  0x56   : > { %s1396_s13 = scalar_lea.vmem %s1720_s3, 2048  ;;  %s1542_s18 = smov [#allocation4]  }
  0x57   : > { %p1397_p13 = scmp.ne.s32.totalorder %s1720_s3, %s1396_s13  ;;  %s1401_s9 = sshll.u32 %s1542_s18, 4  ;;  %s1402_s9 = int_to_ptr.vmem [resolvable:$false] %s1401_s9 }
  0x58   : > { %s1403_s27 = scalar_lea.vmem %s1402_s9, 4096  ;;  %p1404_p5 = scmp.lt.s32.totalorder %s1720_s3, %s1402_s9 }
  0x59   : > { %p1399_p0 = pnand %p1397_p13, %p1383_p6  ;;  %p1405_p8 = scmp.lt.s32.totalorder %s1403_s27, %s1396_s13 }
  0x5b   : > { %p1400_p2 = pneg %p1399_p0  ;;  %p1406_p12 = por %p1405_p8, %p1404_p5 }
  0x5d   : > { %p1407_p1 = pnand %p1406_p12, %p1400_p2 }
  0x5f   : > { %1410 = shalt.err (!%p1407_p1)
}
  0x60   : > { %s2166_s11 = smov 4   ;;  %s2167_s8 = smov 64  }
  0x61   : > { %1224 = dma.hbm_to_vmem [thread:$0]  (!%p1726_p4), %s1718_s12, 2048, %s1720_s3, %s1730_s30, %s2167_s8, %s2167_s8, %s2166_s11  }
  0x62   : > { %p2168_p6 = scmp.ne.s32.totalorder %s2160_s6, 0 }
  0x63   : > { %s218_s26 = sand.u32 (!%p2168_p6), 1, %s1513_s19   ;;  %p2169_p10 = scmp.ne.s32.totalorder (!%p2168_p6), %s2155_s29, 0 }
  0x64   : > { %216 = sbr.rel (%p2168_p6) target bundleno = 551 (0x227), region = 36  ;;  %s1080_s5 = sshll.u32 (!%p2168_p6), %s218_s26, 7 }
  0x65   : > { %s219_s2 = scalar_lea.sflag (!%p2168_p6), [#allocation5], %s218_s26  ;;  %s1764_s4 = scalar_lea.vmem (!%p2168_p6), [#allocation4], %s1080_s5 }
  0x6b   : > { %1484 = dma.done.wait (%p2169_p10), %s219_s2, 2048  }
  0x6c   : > { %1486 = vsyncadd (%p2169_p10), %s219_s2, 4294965248  ;;  %p2170_p3 = scmp.ne.s32.totalorder %s2154_s28, 0 }
  0x6e   : > { %1488 = dma.done.wait (%p2170_p3), [#allocation8], 1024  }
  0x6f   : > { %1490 = vsyncadd (%p2170_p3), [#allocation8], 4294966272  ;;  %s248_s3 = sand.u32 1, %s1501_s16   ;;  %p255_p4 = scmp.eq.s32.totalorder %s1525_s22, 0 }
  0x70   : > { %s1082_s6 = sshll.u32 %s248_s3, 8  ;;  %p256_p7 = scmp.eq.s32.totalorder %s1521_s21, 0 }
  0x71   : > { %s1779_s12 = scalar_lea.vmem [#allocation9], %s1082_s6 }
  0x72   : > { %p257_p9 = pnand %p256_p7, %p255_p4 }
  0x73   : > { %v1543_v0 = vmov (!%p257_p9), 0.0  }
  0x74   : > { %260 = sbr.rel (%p257_p9) target bundleno = 123 (0x7b), region = 48  ;;  %261 = vst [vmem:[#allocation3] sm:$0x3] (!%p257_p9), %v1543_v0 }
  0x7b PF: > { %p1083_p11 = scmp.ne.s32.totalorder %s1525_s22, 0 }
  0x7c   : > { %v1327_v1 = vld [vmem:[#allocation7] sm:$0xff] (!%p1083_p11)   ;;  %v1328_v2 = vld [vmem:[#allocation7 + $0x8] sm:$0xff] (!%p1083_p11)   ;;  %v1329_v3 = vld [vmem:[#allocation7 + $0x10] sm:$0xff] (!%p1083_p11)   ;;  %s1108_s28 = sshll.u32 (!%p1083_p11), %s1521_s21, 8  ;;  %vm759_vm0 = vcmask (!%p1083_p11), 1040384  }
  0x7d   : > { %264 = sbr.rel (%p1083_p11) target bundleno = 452 (0x1c4), region = 52  ;;  %1145 = vmatprep.subr.bf16.mxu0 (!%p1083_p11), %v1327_v1  ;;  %1193 = vmatprep.subr.bf16.mxu1 (!%p1083_p11), %v1327_v1  ;;  %v1330_v4 = vld [vmem:[#allocation7 + $0x18] sm:$0xff] (!%p1083_p11)   ;;  %v1335_v5 = vld [vmem:[%s1764_s4] sm:$0xff] (!%p1083_p11)   ;;  %v1332_v7 = vld [vmem:[#allocation7 + $0x28] sm:$0xff] (!%p1083_p11)   ;;  %s1801_s29 = scalar_lea.vmem (!%p1083_p11), [#allocation2], %s1108_s28 }
  0x7e   : > { %1146 = vmatpush3.bf16.msra.mxu0 (!%p1083_p11), %v1327_v1  ;;  %1201 = vmatpush3.bf16.msra.mxu1 (!%p1083_p11), %v1327_v1  ;;  %v1331_v6 = vld [vmem:[#allocation7 + $0x20] sm:$0xff] (!%p1083_p11)   ;;  %v1333_v9 = vld [vmem:[#allocation7 + $0x30] sm:$0xff] (!%p1083_p11)   ;;  %v1334_v10 = vld [vmem:[#allocation7 + $0x38] sm:$0xff] (!%p1083_p11)  }
  0x7f   : > { %1147 = vmatprep.subr.bf16.mxu0 (!%p1083_p11), %v1328_v2  ;;  %1194 = vmatprep.subr.bf16.mxu1 (!%p1083_p11), %v1328_v2  ;;  %v1343_v8 = vld [vmem:[%s1764_s4 + $0x40] sm:$0xff] (!%p1083_p11)   ;;  %v1336_v11 = vld [vmem:[%s1764_s4 + $0x8] sm:$0xff] (!%p1083_p11)   ;;  %v1337_v13 = vld [vmem:[%s1764_s4 + $0x10] sm:$0xff] (!%p1083_p11)  }
  0x80   : > { %1161 = vmatprep.mubr.bf16.mxu0 (!%p1083_p11), %v1335_v5  ;;  %1177 = vmatprep.mubr.bf16.mxu1 (!%p1083_p11), %v1343_v8  ;;  %v1344_v12 = vld [vmem:[%s1764_s4 + $0x48] sm:$0xff] (!%p1083_p11)   ;;  %v1345_v14 = vld [vmem:[%s1764_s4 + $0x50] sm:$0xff] (!%p1083_p11)   ;;  %v1338_v15 = vld [vmem:[%s1764_s4 + $0x18] sm:$0xff] (!%p1083_p11)  }
  0x81   : > { %v1346_v16 = vld [vmem:[%s1764_s4 + $0x58] sm:$0xff] (!%p1083_p11)   ;;  %v1339_v17 = vld [vmem:[%s1764_s4 + $0x20] sm:$0xff] (!%p1083_p11)   ;;  %v1340_v19 = vld [vmem:[%s1764_s4 + $0x28] sm:$0xff] (!%p1083_p11)  }
  0x82   : > { %1148 = vmatpush3.bf16.msra.mxu0 (!%p1083_p11), %v1328_v2  ;;  %1202 = vmatpush3.bf16.msra.mxu1 (!%p1083_p11), %v1328_v2  ;;  %v1347_v18 = vld [vmem:[%s1764_s4 + $0x60] sm:$0xff] (!%p1083_p11)   ;;  %v1348_v20 = vld [vmem:[%s1764_s4 + $0x68] sm:$0xff] (!%p1083_p11)   ;;  %v1341_v21 = vld [vmem:[%s1764_s4 + $0x30] sm:$0xff] (!%p1083_p11)  }
  0x83   : > { %1149 = vmatprep.subr.bf16.mxu0 (!%p1083_p11), %v1329_v3  ;;  %1195 = vmatprep.subr.bf16.mxu1 (!%p1083_p11), %v1329_v3  ;;  %v1349_v22 = vld [vmem:[%s1764_s4 + $0x70] sm:$0xff] (!%p1083_p11)   ;;  %v1342_v23 = vld [vmem:[%s1764_s4 + $0x38] sm:$0xff] (!%p1083_p11)  }
  0x84   : > { %v1350_v24 = vld [vmem:[%s1764_s4 + $0x78] sm:$0xff]  }
  0x86   : > { %1150 = vmatpush3.bf16.msra.mxu0 %v1329_v3  ;;  %1203 = vmatpush3.bf16.msra.mxu1 %v1329_v3 }
  0x87   : > { %1151 = vmatprep.subr.bf16.mxu0 %v1330_v4  ;;  %1196 = vmatprep.subr.bf16.mxu1 %v1330_v4 }
  0x8a   : > { %1152 = vmatpush3.bf16.msra.mxu0 %v1330_v4  ;;  %1204 = vmatpush3.bf16.msra.mxu1 %v1330_v4 }
  0x8b   : > { %1153 = vmatprep.subr.bf16.mxu0 %v1331_v6  ;;  %1197 = vmatprep.subr.bf16.mxu1 %v1331_v6 }
  0x8e   : > { %1154 = vmatpush3.bf16.msra.mxu0 %v1331_v6  ;;  %1205 = vmatpush3.bf16.msra.mxu1 %v1331_v6 }
  0x8f   : > { %1155 = vmatprep.subr.bf16.mxu0 %v1332_v7  ;;  %1198 = vmatprep.subr.bf16.mxu1 %v1332_v7 }
  0x92   : > { %1156 = vmatpush3.bf16.msra.mxu0 %v1332_v7  ;;  %1206 = vmatpush3.bf16.msra.mxu1 %v1332_v7 }
  0x93   : > { %1157 = vmatprep.subr.bf16.mxu0 %v1333_v9  ;;  %1199 = vmatprep.subr.bf16.mxu1 %v1333_v9 }
  0x96   : > { %1158 = vmatpush3.bf16.msra.mxu0 %v1333_v9  ;;  %1207 = vmatpush3.bf16.msra.mxu1 %v1333_v9 }
  0x97   : > { %1159 = vmatprep.subr.bf16.mxu0 %v1334_v10  ;;  %1200 = vmatprep.subr.bf16.mxu1 %v1334_v10 }
  0x9a   : > { %1160 = vmatpush3.bf16.msra.mxu0 %v1334_v10  ;;  %1208 = vmatpush3.bf16.msra.mxu1 %v1334_v10 }
  0x9d   : > { %1162 = vmatmul.mubr.bf16.vlgmr.msra.gmra.mrb[0].mxu0 %v1336_v11  ;;  %1178 = vmatmul.mubr.bf16.vlgmr.msra.gmra.mrb[0].mxu1 %v1344_v12 }
  0x9e   : > { %1165 = vmatprep.mubr.bf16.mxu0 %v1337_v13  ;;  %1181 = vmatprep.mubr.bf16.mxu1 %v1345_v14 }
  0xa5   : > { %1166 = vmatmul.mubr.bf16.gmra.mrb[4].mxu0 %v1338_v15  ;;  %1182 = vmatmul.mubr.bf16.gmra.mrb[4].mxu1 %v1346_v16 }
  0xa6   : > { %1169 = vmatprep.mubr.bf16.mxu0 %v1339_v17  ;;  %1185 = vmatprep.mubr.bf16.mxu1 %v1347_v18 }
  0xad   : > { %1170 = vmatmul.mubr.bf16.gmra.mrb[8].mxu0 %v1340_v19  ;;  %1186 = vmatmul.mubr.bf16.gmra.mrb[8].mxu1 %v1348_v20 }
  0xae   : > { %1173 = vmatprep.mubr.bf16.mxu0 %v1341_v21  ;;  %1189 = vmatprep.mubr.bf16.mxu1 %v1349_v22 }
  0xb5   : > { %1174 = vmatmul.mubr.bf16.gmra.mrb[12].mxu0 %v1342_v23  ;;  %1190 = vmatmul.mubr.bf16.gmra.mrb[12].mxu1 %v1350_v24 }
 0x170   : > { %v1163_v25 = vpop.f32.mrb[0].mxu0  ;;  %v1799_v26 = vpop.f32.mrb[0].mxu1 }
 0x171   : > { %622 = vst [vmem:[%s1801_s29 + $0x10] sm:$0xff] %v1163_v25  ;;  %v491_v27 = vpop.f32.mrb[1].mxu0  ;;  %638 = vst [vmem:[%s1801_s29 + $0x90] sm:$0xff] %v1799_v26  ;;  %v1806_v28 = vpop.f32.mrb[1].mxu1  ;;  %v691_v36 = vmul.f32 %v1163_v25, %v1163_v25 }
 0x172   : > { %620 = vst [vmem:[%s1801_s29] sm:$0xff] %v491_v27  ;;  %v1164_v29 = vpop.f32.mrb[2].mxu0  ;;  %636 = vst [vmem:[%s1801_s29 + $0x80] sm:$0xff] %v1806_v28  ;;  %v1811_v30 = vpop.f32.mrb[2].mxu1  ;;  %v689_v33 = vmul.f32 %v491_v27, %v491_v27 }
 0x173   : > { %623 = vst [vmem:[%s1801_s29 + $0x18] sm:$0xff] %v1164_v29  ;;  %v494_v31 = vpop.f32.mrb[3].mxu0  ;;  %639 = vst [vmem:[%s1801_s29 + $0x98] sm:$0xff] %v1811_v30  ;;  %v1816_v32 = vpop.f32.mrb[3].mxu1  ;;  %v692_v39 = vmul.f32 %v1164_v29, %v1164_v29 }
 0x174   : > { %621 = vst [vmem:[%s1801_s29 + $0x8] sm:$0xff] %v494_v31  ;;  %v652_v34 = vadd.f32 %v494_v31, %v491_v27  ;;  %v690_v35 = vmul.f32 %v494_v31, %v494_v31  ;;  %637 = vst [vmem:[%s1801_s29 + $0x88] sm:$0xff] %v1816_v32 }
 0x176   : > { %v653_v37 = vadd.f32 %v1163_v25, %v652_v34  ;;  %v721_v38 = vadd.f32 %v690_v35, %v689_v33 }
 0x178   : > { %v722_v40 = vadd.f32 %v721_v38, %v691_v36  ;;  %v1167_v41 = vpop.f32.mrb[4].mxu0  ;;  %v654_v42 = vadd.f32 %v1164_v29, %v653_v37  ;;  %v1821_v43 = vpop.f32.mrb[4].mxu1 }
 0x179   : > { %626 = vst [vmem:[%s1801_s29 + $0x30] sm:$0xff] %v1167_v41  ;;  %v507_v44 = vpop.f32.mrb[5].mxu0  ;;  %642 = vst [vmem:[%s1801_s29 + $0xb0] sm:$0xff] %v1821_v43  ;;  %v1826_v45 = vpop.f32.mrb[5].mxu1  ;;  %v695_v56 = vmul.f32 %v1167_v41, %v1167_v41 }
 0x17a   : > { %624 = vst [vmem:[%s1801_s29 + $0x20] sm:$0xff] %v507_v44  ;;  %v655_v46 = vadd.f32 %v654_v42, %v507_v44  ;;  %v693_v47 = vmul.f32 %v507_v44, %v507_v44  ;;  %v723_v48 = vadd.f32 %v722_v40, %v692_v39  ;;  %v1168_v49 = vpop.f32.mrb[6].mxu0  ;;  %640 = vst [vmem:[%s1801_s29 + $0xa0] sm:$0xff] %v1826_v45  ;;  %v1831_v50 = vpop.f32.mrb[6].mxu1 }
 0x17b   : > { %627 = vst [vmem:[%s1801_s29 + $0x38] sm:$0xff] %v1168_v49  ;;  %v510_v51 = vpop.f32.mrb[7].mxu0  ;;  %643 = vst [vmem:[%s1801_s29 + $0xb8] sm:$0xff] %v1831_v50  ;;  %v1836_v52 = vpop.f32.mrb[7].mxu1  ;;  %v696_v59 = vmul.f32 %v1168_v49, %v1168_v49  ;;  %v705_v42 = vmul.f32 %v1806_v28, %v1806_v28 }
 0x17c   : > { %v724_v53 = vadd.f32 %v723_v48, %v693_v47  ;;  %625 = vst [vmem:[%s1801_s29 + $0x28] sm:$0xff] %v510_v51  ;;  %v656_v54 = vadd.f32 %v655_v46, %v510_v51  ;;  %v694_v55 = vmul.f32 %v510_v51, %v510_v51  ;;  %641 = vst [vmem:[%s1801_s29 + $0xa8] sm:$0xff] %v1836_v52 }
 0x17d   : > { %v707_v51 = vmul.f32 %v1799_v26, %v1799_v26 }
 0x17e   : > { %v657_v57 = vadd.f32 %v1167_v41, %v656_v54  ;;  %v725_v58 = vadd.f32 %v724_v53, %v694_v55  ;;  %v708_v55 = vmul.f32 %v1811_v30, %v1811_v30 }
 0x180   : > { %v726_v60 = vadd.f32 %v725_v58, %v695_v56  ;;  %v1171_v61 = vpop.f32.mrb[8].mxu0  ;;  %v658_v62 = vadd.f32 %v1168_v49, %v657_v57  ;;  %v1841_v63 = vpop.f32.mrb[8].mxu1  ;;  %v706_v49 = vmul.f32 %v1816_v32, %v1816_v32 }
 0x181   : > { %630 = vst [vmem:[%s1801_s29 + $0x50] sm:$0xff] %v1171_v61  ;;  %v523_v0 = vpop.f32.mrb[9].mxu0  ;;  %646 = vst [vmem:[%s1801_s29 + $0xd0] sm:$0xff] %v1841_v63  ;;  %v1846_v1 = vpop.f32.mrb[9].mxu1  ;;  %v699_v12 = vmul.f32 %v1171_v61, %v1171_v61 }
 0x182   : > { %628 = vst [vmem:[%s1801_s29 + $0x40] sm:$0xff] %v523_v0  ;;  %v659_v2 = vadd.f32 %v658_v62, %v523_v0  ;;  %v697_v3 = vmul.f32 %v523_v0, %v523_v0  ;;  %v727_v4 = vadd.f32 %v726_v60, %v696_v59  ;;  %v1172_v5 = vpop.f32.mrb[10].mxu0  ;;  %644 = vst [vmem:[%s1801_s29 + $0xc0] sm:$0xff] %v1846_v1  ;;  %v1851_v6 = vpop.f32.mrb[10].mxu1 }
 0x183   : > { %631 = vst [vmem:[%s1801_s29 + $0x58] sm:$0xff] %v1172_v5  ;;  %v526_v7 = vpop.f32.mrb[11].mxu0  ;;  %647 = vst [vmem:[%s1801_s29 + $0xd8] sm:$0xff] %v1851_v6  ;;  %v1856_v8 = vpop.f32.mrb[11].mxu1  ;;  %v700_v15 = vmul.f32 %v1172_v5, %v1172_v5 }
 0x184   : > { %v728_v9 = vadd.f32 %v727_v4, %v697_v3  ;;  %629 = vst [vmem:[%s1801_s29 + $0x48] sm:$0xff] %v526_v7  ;;  %v660_v10 = vadd.f32 %v659_v2, %v526_v7  ;;  %v698_v11 = vmul.f32 %v526_v7, %v526_v7  ;;  %645 = vst [vmem:[%s1801_s29 + $0xc8] sm:$0xff] %v1856_v8 }
 0x186   : > { %v661_v13 = vadd.f32 %v1171_v61, %v660_v10  ;;  %v729_v14 = vadd.f32 %v728_v9, %v698_v11  ;;  %v710_v61 = vmul.f32 %v1836_v52, %v1836_v52  ;;  %v714_v9 = vmul.f32 %v1856_v8, %v1856_v8 }
 0x188   : > { %v730_v16 = vadd.f32 %v729_v14, %v699_v12  ;;  %v1175_v17 = vpop.f32.mrb[12].mxu0  ;;  %v662_v18 = vadd.f32 %v1172_v5, %v661_v13  ;;  %v1861_v19 = vpop.f32.mrb[12].mxu1 }
 0x189   : > { %634 = vst [vmem:[%s1801_s29 + $0x70] sm:$0xff] %v1175_v17  ;;  %v539_v20 = vpop.f32.mrb[13].mxu0  ;;  %650 = vst [vmem:[%s1801_s29 + $0xf0] sm:$0xff] %v1861_v19  ;;  %v603_v21 = vpop.f32.mrb[13].mxu1  ;;  %v703_v36 = vmul.f32 %v1175_v17, %v1175_v17 }
 0x18a   : > { %632 = vst [vmem:[%s1801_s29 + $0x60] sm:$0xff] %v539_v20  ;;  %v663_v22 = vadd.f32 %v662_v18, %v539_v20  ;;  %v701_v23 = vmul.f32 %v539_v20, %v539_v20  ;;  %v731_v24 = vadd.f32 %v730_v16, %v700_v15  ;;  %v1176_v25 = vpop.f32.mrb[14].mxu0  ;;  %648 = vst [vmem:[%s1801_s29 + $0xe0] sm:$0xff] %v603_v21  ;;  %v1192_v27 = vpop.f32.mrb[14].mxu1 }
 0x18b   : > { %635 = vst [vmem:[%s1801_s29 + $0x78] sm:$0xff] %v1176_v25  ;;  %v542_v29 = vpop.f32.mrb[15].mxu0  ;;  %651 = vst [vmem:[%s1801_s29 + $0xf8] sm:$0xff] %v1192_v27  ;;  %v606_v31 = vpop.f32.mrb[15].mxu1  ;;  %v704_v39 = vmul.f32 %v1176_v25, %v1176_v25 }
 0x18c   : > { %v732_v33 = vadd.f32 %v731_v24, %v701_v23  ;;  %633 = vst [vmem:[%s1801_s29 + $0x68] sm:$0xff] %v542_v29  ;;  %v664_v34 = vadd.f32 %v663_v22, %v542_v29  ;;  %v702_v35 = vmul.f32 %v542_v29, %v542_v29  ;;  %649 = vst [vmem:[%s1801_s29 + $0xe8] sm:$0xff] %v606_v31 }
 0x18d   : > { %v718_v18 = vmul.f32 %v606_v31, %v606_v31 }
 0x18e   : > { %v665_v37 = vadd.f32 %v1175_v17, %v664_v34  ;;  %v733_v38 = vadd.f32 %v732_v33, %v702_v35 }
 0x190   : > { %v734_v40 = vadd.f32 %v733_v38, %v703_v36  ;;  %v666_v41 = vadd.f32 %v1176_v25, %v665_v37 }
 0x192   : > { %v667_v44 = vadd.f32 %v666_v41, %v1806_v28  ;;  %v735_v46 = vadd.f32 %v734_v40, %v704_v39  ;;  %v709_v28 = vmul.f32 %v1826_v45, %v1826_v45  ;;  %v758_v41 = vld [vmem:[#allocation3] sm:$0x3] }
 0x194   : > { %v736_v47 = vadd.f32 %v735_v46, %v705_v42  ;;  %v668_v48 = vadd.f32 %v667_v44, %v1816_v32 }
 0x196   : > { %v669_v53 = vadd.f32 %v1799_v26, %v668_v48  ;;  %v737_v54 = vadd.f32 %v736_v47, %v706_v49  ;;  %v711_v26 = vmul.f32 %v1821_v43, %v1821_v43 }
 0x198   : > { %v738_v56 = vadd.f32 %v737_v54, %v707_v51  ;;  %v670_v57 = vadd.f32 %v1811_v30, %v669_v53  ;;  %v712_v30 = vmul.f32 %v1831_v50, %v1831_v50 }
 0x19a   : > { %v671_v58 = vadd.f32 %v670_v57, %v1826_v45  ;;  %v739_v59 = vadd.f32 %v738_v56, %v708_v55  ;;  %v713_v45 = vmul.f32 %v1846_v1, %v1846_v1 }
 0x19c   : > { %v740_v60 = vadd.f32 %v739_v59, %v709_v28  ;;  %v672_v32 = vadd.f32 %v671_v58, %v1836_v52 }
 0x19e   : > { %v673_v62 = vadd.f32 %v1821_v43, %v672_v32  ;;  %v741_v0 = vadd.f32 %v740_v60, %v710_v61  ;;  %v715_v43 = vmul.f32 %v1841_v63, %v1841_v63 }
 0x1a0   : > { %v742_v2 = vadd.f32 %v741_v0, %v711_v26  ;;  %v674_v3 = vadd.f32 %v1831_v50, %v673_v62  ;;  %v716_v50 = vmul.f32 %v1851_v6, %v1851_v6 }
 0x1a2   : > { %v675_v4 = vadd.f32 %v674_v3, %v1846_v1  ;;  %v743_v5 = vadd.f32 %v742_v2, %v712_v30  ;;  %v717_v1 = vmul.f32 %v603_v21, %v603_v21 }
 0x1a4   : > { %v744_v7 = vadd.f32 %v743_v5, %v713_v45  ;;  %v676_v52 = vadd.f32 %v675_v4, %v1856_v8  ;;  %v719_v8 = vmul.f32 %v1861_v19, %v1861_v19 }
 0x1a6   : > { %v677_v10 = vadd.f32 %v1841_v63, %v676_v52  ;;  %v745_v11 = vadd.f32 %v744_v7, %v714_v9  ;;  %v720_v63 = vmul.f32 %v1192_v27, %v1192_v27 }
 0x1a8   : > { %v746_v12 = vadd.f32 %v745_v11, %v715_v43  ;;  %v678_v13 = vadd.f32 %v1851_v6, %v677_v10 }
 0x1aa   : > { %v679_v14 = vadd.f32 %v678_v13, %v603_v21  ;;  %v747_v15 = vadd.f32 %v746_v12, %v716_v50 }
 0x1ac   : > { %v748_v16 = vadd.f32 %v747_v15, %v717_v1  ;;  %v680_v17 = vadd.f32 %v679_v14, %v606_v31 }
 0x1ae   : > { %v681_v20 = vadd.f32 %v1861_v19, %v680_v17  ;;  %v749_v22 = vadd.f32 %v748_v16, %v718_v18 }
 0x1b0   : > { %v682_v23 = vadd.f32 %v1192_v27, %v681_v20  ;;  %v750_v24 = vadd.f32 %v749_v22, %v719_v8 }
 0x1b2   : > { %v683_v25 = vrot.slane %v682_v23, 4  ;;  %v751_v29 = vadd.f32 %v750_v24, %v720_v63 }
 0x1b4   : > { %v684_v33 = vadd.f32 %v683_v25, %v682_v23  ;;  %v752_v34 = vrot.slane %v751_v29, 4 }
 0x1b6   : > { %v685_v6 = vrot.slane %v684_v33, 2  ;;  %v753_v35 = vadd.f32 %v752_v34, %v751_v29 }
 0x1b8   : > { %v686_v21 = vadd.f32 %v685_v6, %v684_v33  ;;  %v754_v36 = vrot.slane %v753_v35, 2 }
 0x1ba   : > { %v687_v37 = vrot.slane %v686_v21, 1  ;;  %v755_v38 = vadd.f32 %v754_v36, %v753_v35 }
 0x1bc   : > { %v756_v31 = vrot.slane %v755_v38, 1  ;;  %v688_v39 = vadd.f32 %v687_v37, %v686_v21 }
 0x1be   : > { %v757_v40 = vadd.f32 %v756_v31, %v755_v38 }
 0x1c0   : > { %v760_v19 = vsel %vm759_vm0, %v688_v39, %v757_v40 }
 0x1c1   : > { %v761_v42 = vadd.f32 %v760_v19, %v758_v41 }
 0x1c3   : > { %762 = vst [vmem:[#allocation3] sm:$0x3] %v761_v42 }
 0x1c4 PF: > { %p1109_p13 = scmp.ne.s32.totalorder %s1525_s22, 1 }
 0x1c5   : > { %p1110_p0 = scmp.ne.s32.totalorder (!%p1109_p13), %s1521_s21, 0 }
 0x1c6   : > { %766 = sbr.rel (%p1109_p13) target bundleno = 523 (0x20b), region = 56 }
 0x1cd   : > { %769 = sbr.rel (%p1110_p0) target bundleno = 490 (0x1ea), region = 60  ;;  %v770_v27 = vld [vmem:[#allocation3] sm:$0x1] (!%p1110_p0)  ;;  %v772_v44 = vld [vmem:[#allocation3 + $0x1] sm:$0x1] (!%p1110_p0)  ;;  %s2171_s1 = sld [smem:[#allocation20_spill]] (!%p1110_p0) }
 0x1ce   : > { %v771_v46 = vmul.f32 (!%p1110_p0), 0.001953125, %v770_v27  ;;  %v773_v47 = vmul.f32 (!%p1110_p0), 0.001953125, %v772_v44  ;;  %s2172_s13 = sld [smem:[#allocation21_spill]] (!%p1110_p0) }
 0x1d0   : > { %v774_v48 = vmul.f32 (!%p1110_p0), %v771_v46, %v771_v46 }
 0x1d2   : > { %v775_v49 = vsub.f32 (!%p1110_p0), %v773_v47, %v774_v48 }
 0x1d3   : > { %v779_v54 = vld [vmem:[%s2171_s1] sm:$0x1] (!%p1110_p0) }
 0x1d4   : > { %v776_v51 = vmax.f32 %v775_v49, 0.0  ;;  %v781_v57 = vld [vmem:[%s2172_s13] sm:$0x1] }
 0x1d6   : > { %v777_v53 = vadd.f32 1e-05, %v776_v51 }
 0x1d8   : > { %1351 = vrsqrt.f32 %v777_v53 }
 0x1e2   : > { %v1352_v55 = vpop.eup %1351 }
 0x1e3   : > { %v780_v56 = vmul.f32 %v1352_v55, %v779_v54 }
 0x1e5   : > { %784 = vst [vmem:[#allocation3] sm:$0x1] %v780_v56  ;;  %v782_v28 = vmul.f32 %v780_v56, %v771_v46 }
 0x1e7   : > { %v783_v58 = vsub.f32 %v781_v57, %v782_v28 }
 0x1e9   : > { %785 = vst [vmem:[#allocation3 + $0x1] sm:$0x1] %v783_v58 }
 0x1ea PF: > { %s1111_s18 = sshll.u32 %s1521_s21, 8 }
 0x1eb   : > { %s1924_s9 = scalar_lea.vmem [#allocation2], %s1111_s18 }
 0x1ec   : > { %v1920_v59 = vld [vmem:[#allocation3] ss:$0 sm:$0xff]  ;;  %v789_v61 = vld [vmem:[%s1924_s9 + $0x8] sm:$0xff]  ;;  %v790_v26 = vld [vmem:[%s1924_s9 + $0x10] sm:$0xff] }
 0x1ed   : > { %v788_v32 = vld [vmem:[%s1924_s9] sm:$0xff]  ;;  %v826_v0 = vmul.f32 %v1920_v59, %v789_v61  ;;  %v827_v30 = vmul.f32 %v1920_v59, %v790_v26  ;;  %v791_v2 = vld [vmem:[%s1924_s9 + $0x18] sm:$0xff]  ;;  %v793_v45 = vld [vmem:[%s1924_s9 + $0x28] sm:$0xff] }
 0x1ee   : > { %v825_v62 = vmul.f32 %v1920_v59, %v788_v32  ;;  %v792_v3 = vld [vmem:[%s1924_s9 + $0x20] sm:$0xff]  ;;  %v828_v4 = vmul.f32 %v1920_v59, %v791_v2  ;;  %v830_v7 = vmul.f32 %v1920_v59, %v793_v45  ;;  %v794_v52 = vld [vmem:[%s1924_s9 + $0x30] sm:$0xff]  ;;  %v795_v9 = vld [vmem:[%s1924_s9 + $0x38] sm:$0xff] }
 0x1ef   : > { %v829_v5 = vmul.f32 %v1920_v59, %v792_v3  ;;  %v831_v50 = vmul.f32 %v1920_v59, %v794_v52  ;;  %v832_v14 = vmul.f32 %v1920_v59, %v795_v9  ;;  %v796_v15 = vld [vmem:[%s1924_s9 + $0x40] sm:$0xff]  ;;  %v797_v16 = vld [vmem:[%s1924_s9 + $0x48] sm:$0xff]  ;;  %v798_v17 = vld [vmem:[%s1924_s9 + $0x50] sm:$0xff] }
 0x1f0   : > { %v1922_v60 = vld [vmem:[#allocation3 + $0x1] ss:$0 sm:$0xff]  ;;  %v799_v63 = vld [vmem:[%s1924_s9 + $0x58] sm:$0xff]  ;;  %v801_v24 = vld [vmem:[%s1924_s9 + $0x68] sm:$0xff]  ;;  %v833_v21 = vmul.f32 %v1920_v59, %v796_v15  ;;  %v834_v36 = vmul.f32 %v1920_v59, %v797_v16  ;;  %v835_v37 = vmul.f32 %v1920_v59, %v798_v17 }
 0x1f1   : > { %v862_v43 = vadd.f32 %v1922_v60, %v825_v62  ;;  %v863_v10 = vadd.f32 %v1922_v60, %v826_v0  ;;  %v864_v11 = vadd.f32 %v1922_v60, %v827_v30  ;;  %v865_v12 = vadd.f32 %v1922_v60, %v828_v4  ;;  %v800_v23 = vld [vmem:[%s1924_s9 + $0x60] sm:$0xff]  ;;  %v802_v6 = vld [vmem:[%s1924_s9 + $0x70] sm:$0xff]  ;;  %v803_v38 = vld [vmem:[%s1924_s9 + $0x78] sm:$0xff] }
 0x1f2   : > { %v866_v13 = vadd.f32 %v1922_v60, %v829_v5  ;;  %v867_v1 = vadd.f32 %v1922_v60, %v830_v7  ;;  %v868_v22 = vadd.f32 %v1922_v60, %v831_v50  ;;  %v869_v34 = vadd.f32 %v1922_v60, %v832_v14  ;;  %v804_v51 = vld [vmem:[%s1924_s9 + $0x80] sm:$0xff]  ;;  %v805_v53 = vld [vmem:[%s1924_s9 + $0x88] sm:$0xff]  ;;  %v806_v54 = vld [vmem:[%s1924_s9 + $0x90] sm:$0xff] }
 0x1f3   : > { %v894_v18 = vmax.f32 %v862_v43, 0.0  ;;  %v895_v8 = vmax.f32 %v863_v10, 0.0  ;;  %v896_v20 = vmax.f32 %v864_v11, 0.0  ;;  %v897_v25 = vmax.f32 %v865_v12, 0.0  ;;  %v807_v58 = vld [vmem:[%s1924_s9 + $0x98] sm:$0xff]  ;;  %v808_v32 = vld [vmem:[%s1924_s9 + $0xa0] sm:$0xff] }
 0x1f4   : > { %v898_v29 = vmax.f32 %v866_v13, 0.0  ;;  %v899_v33 = vmax.f32 %v867_v1, 0.0  ;;  %v900_v35 = vmax.f32 %v868_v22, 0.0  ;;  %v901_v31 = vmax.f32 %v869_v34, 0.0  ;;  %v809_v61 = vld [vmem:[%s1924_s9 + $0xa8] sm:$0xff]  ;;  %v810_v2 = vld [vmem:[%s1924_s9 + $0xb0] sm:$0xff] }
 0x1f5   : > { %926 = vst [vmem:[%s1779_s12] sm:$0xff] %v894_v18  ;;  %927 = vst [vmem:[%s1779_s12 + $0x8] sm:$0xff] %v895_v8  ;;  %v836_v39 = vmul.f32 %v1920_v59, %v799_v63  ;;  %v837_v40 = vmul.f32 %v1920_v59, %v800_v23  ;;  %v838_v41 = vmul.f32 %v1920_v59, %v801_v24  ;;  %v811_v7 = vld [vmem:[%s1924_s9 + $0xb8] sm:$0xff]  ;;  %v812_v17 = vld [vmem:[%s1924_s9 + $0xc0] sm:$0xff] }
 0x1f6   : > { %928 = vst [vmem:[%s1779_s12 + $0x10] sm:$0xff] %v896_v20  ;;  %929 = vst [vmem:[%s1779_s12 + $0x18] sm:$0xff] %v897_v25  ;;  %v870_v19 = vadd.f32 %v1922_v60, %v833_v21  ;;  %v871_v42 = vadd.f32 %v1922_v60, %v834_v36  ;;  %v872_v27 = vadd.f32 %v1922_v60, %v835_v37  ;;  %v813_v18 = vld [vmem:[%s1924_s9 + $0xc8] sm:$0xff]  ;;  %v814_v8 = vld [vmem:[%s1924_s9 + $0xd0] sm:$0xff] }
 0x1f7   : > { %930 = vst [vmem:[%s1779_s12 + $0x20] sm:$0xff] %v898_v29  ;;  %931 = vst [vmem:[%s1779_s12 + $0x28] sm:$0xff] %v899_v33  ;;  %v839_v44 = vmul.f32 %v1920_v59, %v802_v6  ;;  %v873_v46 = vadd.f32 %v1922_v60, %v836_v39  ;;  %v874_v47 = vadd.f32 %v1922_v60, %v837_v40  ;;  %v815_v24 = vld [vmem:[%s1924_s9 + $0xd8] sm:$0xff]  ;;  %v816_v25 = vld [vmem:[%s1924_s9 + $0xe0] sm:$0xff] }
 0x1f8   : > { %932 = vst [vmem:[%s1779_s12 + $0x30] sm:$0xff] %v900_v35  ;;  %933 = vst [vmem:[%s1779_s12 + $0x38] sm:$0xff] %v901_v31  ;;  %v875_v48 = vadd.f32 %v1922_v60, %v838_v41  ;;  %v840_v49 = vmul.f32 %v1920_v59, %v803_v38  ;;  %v902_v55 = vmax.f32 %v870_v19, 0.0  ;;  %v903_v56 = vmax.f32 %v871_v42, 0.0  ;;  %v817_v29 = vld [vmem:[%s1924_s9 + $0xe8] sm:$0xff]  ;;  %v818_v21 = vld [vmem:[%s1924_s9 + $0xf0] sm:$0xff] }
 0x1f9   : > { %v904_v57 = vmax.f32 %v872_v27, 0.0  ;;  %v876_v28 = vadd.f32 %v1922_v60, %v839_v44  ;;  %v905_v26 = vmax.f32 %v873_v46, 0.0  ;;  %v906_v62 = vmax.f32 %v874_v47, 0.0  ;;  %v819_v39 = vld [vmem:[%s1924_s9 + $0xf8] sm:$0xff] }
 0x1fa   : > { %v907_v0 = vmax.f32 %v875_v48, 0.0  ;;  %v877_v30 = vadd.f32 %v1922_v60, %v840_v49  ;;  %934 = vst [vmem:[%s1779_s12 + $0x40] sm:$0xff] %v902_v55  ;;  %935 = vst [vmem:[%s1779_s12 + $0x48] sm:$0xff] %v903_v56  ;;  %v841_v45 = vmul.f32 %v1920_v59, %v804_v51  ;;  %v842_v4 = vmul.f32 %v1920_v59, %v805_v53 }
 0x1fb   : > { %936 = vst [vmem:[%s1779_s12 + $0x50] sm:$0xff] %v904_v57  ;;  %v908_v3 = vmax.f32 %v876_v28, 0.0  ;;  %v843_v5 = vmul.f32 %v1920_v59, %v806_v54  ;;  %937 = vst [vmem:[%s1779_s12 + $0x58] sm:$0xff] %v905_v26  ;;  %v844_v9 = vmul.f32 %v1920_v59, %v807_v58  ;;  %v845_v43 = vmul.f32 %v1920_v59, %v808_v32 }
 0x1fc   : > { %938 = vst [vmem:[%s1779_s12 + $0x60] sm:$0xff] %v906_v62  ;;  %939 = vst [vmem:[%s1779_s12 + $0x68] sm:$0xff] %v907_v0  ;;  %v909_v52 = vmax.f32 %v877_v30, 0.0  ;;  %v846_v10 = vmul.f32 %v1920_v59, %v809_v61  ;;  %v878_v11 = vadd.f32 %v1922_v60, %v841_v45  ;;  %v879_v50 = vadd.f32 %v1922_v60, %v842_v4 }
 0x1fd   : > { %940 = vst [vmem:[%s1779_s12 + $0x70] sm:$0xff] %v908_v3  ;;  %v880_v12 = vadd.f32 %v1922_v60, %v843_v5  ;;  %v847_v13 = vmul.f32 %v1920_v59, %v810_v2  ;;  %v881_v1 = vadd.f32 %v1922_v60, %v844_v9  ;;  %v882_v14 = vadd.f32 %v1922_v60, %v845_v43 }
 0x1fe   : > { %941 = vst [vmem:[%s1779_s12 + $0x78] sm:$0xff] %v909_v52  ;;  %v883_v15 = vadd.f32 %v1922_v60, %v846_v10  ;;  %v848_v16 = vmul.f32 %v1920_v59, %v811_v7  ;;  %v910_v20 = vmax.f32 %v878_v11, 0.0  ;;  %v911_v22 = vmax.f32 %v879_v50, 0.0 }
 0x1ff   : > { %v912_v63 = vmax.f32 %v880_v12, 0.0  ;;  %v884_v23 = vadd.f32 %v1922_v60, %v847_v13  ;;  %v913_v33 = vmax.f32 %v881_v1, 0.0  ;;  %v914_v34 = vmax.f32 %v882_v14, 0.0 }
 0x200   : > { %v915_v6 = vmax.f32 %v883_v15, 0.0  ;;  %v885_v35 = vadd.f32 %v1922_v60, %v848_v16  ;;  %942 = vst [vmem:[%s1779_s12 + $0x80] sm:$0xff] %v910_v20  ;;  %943 = vst [vmem:[%s1779_s12 + $0x88] sm:$0xff] %v911_v22  ;;  %v849_v37 = vmul.f32 %v1920_v59, %v812_v17  ;;  %v850_v38 = vmul.f32 %v1920_v59, %v813_v18 }
 0x201   : > { %944 = vst [vmem:[%s1779_s12 + $0x90] sm:$0xff] %v912_v63  ;;  %v916_v36 = vmax.f32 %v884_v23, 0.0  ;;  %v851_v31 = vmul.f32 %v1920_v59, %v814_v8  ;;  %945 = vst [vmem:[%s1779_s12 + $0x98] sm:$0xff] %v913_v33  ;;  %v852_v41 = vmul.f32 %v1920_v59, %v815_v24  ;;  %v853_v19 = vmul.f32 %v1920_v59, %v816_v25 }
 0x202   : > { %946 = vst [vmem:[%s1779_s12 + $0xa0] sm:$0xff] %v914_v34  ;;  %947 = vst [vmem:[%s1779_s12 + $0xa8] sm:$0xff] %v915_v6  ;;  %v917_v40 = vmax.f32 %v885_v35, 0.0  ;;  %v854_v42 = vmul.f32 %v1920_v59, %v817_v29  ;;  %v886_v27 = vadd.f32 %v1922_v60, %v849_v37  ;;  %v887_v44 = vadd.f32 %v1922_v60, %v850_v38 }
 0x203   : > { %948 = vst [vmem:[%s1779_s12 + $0xb0] sm:$0xff] %v916_v36  ;;  %v888_v46 = vadd.f32 %v1922_v60, %v851_v31  ;;  %v855_v47 = vmul.f32 %v1920_v59, %v818_v21  ;;  %v889_v48 = vadd.f32 %v1922_v60, %v852_v41  ;;  %v890_v49 = vadd.f32 %v1922_v60, %v853_v19 }
 0x204   : > { %949 = vst [vmem:[%s1779_s12 + $0xb8] sm:$0xff] %v917_v40  ;;  %v891_v51 = vadd.f32 %v1922_v60, %v854_v42  ;;  %v856_v53 = vmul.f32 %v1920_v59, %v819_v39  ;;  %v918_v54 = vmax.f32 %v886_v27, 0.0  ;;  %v919_v55 = vmax.f32 %v887_v44, 0.0 }
 0x205   : > { %v920_v56 = vmax.f32 %v888_v46, 0.0  ;;  %v892_v57 = vadd.f32 %v1922_v60, %v855_v47  ;;  %v921_v28 = vmax.f32 %v889_v48, 0.0  ;;  %v922_v58 = vmax.f32 %v890_v49, 0.0 }
 0x206   : > { %v923_v32 = vmax.f32 %v891_v51, 0.0  ;;  %v893_v61 = vadd.f32 %v1922_v60, %v856_v53  ;;  %950 = vst [vmem:[%s1779_s12 + $0xc0] sm:$0xff] %v918_v54  ;;  %951 = vst [vmem:[%s1779_s12 + $0xc8] sm:$0xff] %v919_v55 }
 0x207   : > { %952 = vst [vmem:[%s1779_s12 + $0xd0] sm:$0xff] %v920_v56  ;;  %v924_v26 = vmax.f32 %v892_v57, 0.0  ;;  %953 = vst [vmem:[%s1779_s12 + $0xd8] sm:$0xff] %v921_v28 }
 0x208   : > { %954 = vst [vmem:[%s1779_s12 + $0xe0] sm:$0xff] %v922_v58  ;;  %955 = vst [vmem:[%s1779_s12 + $0xe8] sm:$0xff] %v923_v32  ;;  %v925_v59 = vmax.f32 %v893_v61, 0.0 }
 0x209   : > { %956 = vst [vmem:[%s1779_s12 + $0xf0] sm:$0xff] %v924_v26 }
 0x20a   : > { %957 = vst [vmem:[%s1779_s12 + $0xf8] sm:$0xff] %v925_v59 }
 0x20b PF: > { %s2173_s27 = sld [smem:[#allocation16_spill]]  ;;  %s966_s11 = smul.u32 %s1521_s21, %s1525_s22 }
 0x20c   : > { %s973_s8 = sshll.u32 %s1779_s12, 4  ;;  %s2174_s4 = sld [smem:[#allocation22_spill]]  ;;  %s2057_s8 = int_to_ptr.vmem [resolvable:$true] %s973_s8 }
 0x20d   : > { %s1120_s26 = sshll.u32 %s966_s11, 12  ;;  %s2066_s28 = scalar_lea.sflag [#allocation6], %s248_s3 }
 0x20e   : > { %s1411_s29 = scalar_lea.vmem %s2057_s8, 4096  ;;  %s1544_s21 = smov [#allocation9]  }
 0x20f   : > { %p1412_p2 = scmp.ne.s32.totalorder %s2057_s8, %s1411_s29  ;;  %s1415_s22 = sshll.u32 %s1544_s21, 4  ;;  %s1416_s22 = int_to_ptr.vmem [resolvable:$false] %s1415_s22 }
 0x210   : > { %s1417_s12 = scalar_lea.vmem %s1416_s22, 8192  ;;  %p1418_p1 = scmp.lt.s32.totalorder %s2057_s8, %s1416_s22 }
 0x211   : > { %p2175_p5 = scmp.ne.s32.totalorder %s2173_s27, 0  ;;  %p1419_p6 = scmp.lt.s32.totalorder %s1417_s12, %s1411_s29 }
 0x212   : > { %s2062_s6 = scalar_lea.hbm %s2174_s4, %s1120_s26 }
 0x213   : > { %p1413_p8 = pnand %p1412_p2, %p2175_p5  ;;  %p1420_p10 = por %p1419_p6, %p1418_p1 }
 0x215   : > { %p1414_p12 = pneg %p1413_p8 }
 0x217   : > { %p1421_p3 = pnand %p1420_p10, %p1414_p12 }
 0x219   : > { %1424 = shalt.err (!%p1421_p3)
}
 0x21a   : > { %s1425_s3 = scalar_lea.hbm %s2062_s6, 4096  ;;  %s1429_s1 = scalar_lea.hbm %s2174_s4, 8192 }
 0x21b   : > { %p1426_p4 = scmp.ne.s32.totalorder %s2062_s6, %s1425_s3  ;;  %p1430_p11 = scmp.lt.u32.totalorder %s2062_s6, %s2174_s4 }
 0x21c   : > { %p1431_p13 = scmp.lt.u32.totalorder %s1429_s1, %s1425_s3  ;;  %p1433_p2 = scmp.lt.u32.totalorder %s1425_s3, %s2062_s6 }
 0x21d   : > { %p1427_p7 = pnand %p1426_p4, %p2175_p5 }
 0x21e   : > { %p1432_p0 = por %p1431_p13, %p1430_p11 }
 0x21f   : > { %p1428_p9 = pneg %p1427_p7 }
 0x220   : > { %p1434_p8 = por %p1433_p2, %p1432_p0 }
 0x222   : > { %p1435_p12 = pnand %p1434_p8, %p1428_p9 }
 0x224   : > { %1438 = shalt.err (!%p1435_p12)
}
 0x225   : > { %s1545_s13 = smov 128   ;;  %s1546_s18 = smov 8  }
 0x226   : > { %1215 = dma.vmem_to_hbm [thread:$0]  (%p2175_p5), %s2057_s8, 4096, %s2062_s6, %s2066_s28, %s1545_s13, %s1545_s13, %s1546_s18  }
 0x227 PF: > { %s2176_s9 = sld [smem:[#allocation13_spill]]  ;;  %s2177_s11 = sld [smem:[#allocation17_spill]] }
 0x228   : > { %p1232_p1 = scmp.ge.s32.totalorder %s1537_s25, 2 }
 0x22d   : > { %s988_s26 = sand.u32 1, %s2176_s9   ;;  %p2178_p6 = scmp.ne.s32.totalorder %s2177_s11, 0 }
 0x22e   : > { %s989_s5 = scalar_lea.sflag [#allocation6], %s988_s26 }
 0x22f   : > { %p1226_p10 = pnand %p1232_p1, %p2178_p6 }
 0x231   : > { %1492 = dma.done.wait (!%p1226_p10), %s989_s5, 4096  }
 0x232   : > { %1494 = vsyncadd (!%p1226_p10), %s989_s5, 4294963200  ;;  %s21_s25 = sadd.s32 1, %s1537_s25   ;;  %s2179_s21 = sld [smem:[#allocation14_spill]] }
 0x233   : > { %p18_p3 = scmp.ge.s32.totalorder %s21_s25, 6   ;;  %s2180_s22 = sld [smem:[#allocation15_spill]] }
 0x234   : > { %s2181_s27 = sld [smem:[#allocation18_spill]]  ;;  %s2182_s15 = smov %s1501_s16 }
 0x235   : > { %s2183_s16 = smov %s1505_s17  ;;  %s2184_s17 = smov %s1710_s24 }
 0x236   : > { %s2185_s18 = smov %s1513_s19  ;;  %s2186_s19 = smov %s1517_s20 }
 0x237   : > { %s2187_s20 = smov %s1713_s23  ;;  %s2188_s23 = smov %s2191_s14 }
 0x238   :  { %20 = sbr.rel (!%p18_p3) target bundleno = 15 (0xf), region = 103 }
 0x23a   : > { %s2189_s24 = smov %s2181_s27 }
 0x23f   :  { %994 = vsyncpa [#allocation5], 1 }
 0x240   :  { %996 = vsyncpa [#allocation5 + $0x1], 1 }
 0x241   :  { %997 = vsyncpa [#allocation8], 1 }
 0x242   :  { %998 = vsyncpa [#allocation6], 1 }
 0x243   :  { %1000 = vsyncpa [#allocation6 + $0x1], 1 }

</bundles_post_ra>
